<compile_context>
chip_gen: v7x
topology: tpu7x:2x2x1
jax: 0.10.0
libtpu: 0.0.40
codegen_flags: <defaults>
</compile_context>

<pallas_src>
import functools

import jax
import jax.numpy as jnp
import numpy as np
from jax import lax
from jax.experimental import pallas as pl
from jax.experimental.pallas import tpu as pltpu


def _conv_mm_kernel(a_ref, w_ref, b_ref, o_ref):
    """Fused im2col matmul + bias.

    a_ref: (Kp, tM)   im2col tile  (contraction on sublanes, N*Ho*Wo on lanes)
    w_ref: (Cout, Kp) flattened conv weight
    b_ref: (Cout, 1)  bias (f32)
    o_ref: (Cout, tM) lane-dense output tile
    """
    acc = jnp.dot(w_ref[...], a_ref[...], preferred_element_type=jnp.float32)
    o_ref[...] = (acc + b_ref[...]).astype(o_ref.dtype)


def conv_layer_forward(x_nchw, weight_oihw, bias, kernel_size, stride,
                       compute_dtype=None, block_m=2048):
    """ReflectionPad2d(k//2) + Conv2d(k, stride) matching the PyTorch ConvLayer."""
    N, Cin, Hin, Win = x_nchw.shape
    Cout = weight_oihw.shape[0]
    KH = KW = kernel_size
    p = kernel_size // 2

    # ---- glue: reflection pad + strided im2col gather (pure data movement) ----
    x_pad = jnp.pad(x_nchw, ((0, 0), (0, 0), (p, p), (p, p)), mode="reflect")
    Hp, Wp = Hin + 2 * p, Win + 2 * p
    Ho = (Hp - KH) // stride + 1
    Wo = (Wp - KW) // stride + 1

    cdt = compute_dtype if compute_dtype is not None else x_nchw.dtype

    # taps[kh*KW+kw] has shape (N, Cin, Ho, Wo); only strided output positions kept.
    taps = [
        x_pad[:, :,
              kh:kh + (Ho - 1) * stride + 1:stride,
              kw:kw + (Wo - 1) * stride + 1:stride]
        for kh in range(KH) for kw in range(KW)
    ]
    cols = jnp.stack(taps, axis=0)                  # (KH*KW, N, Cin, Ho, Wo)
    cols = jnp.transpose(cols, (2, 0, 1, 3, 4))     # (Cin, KH*KW, N, Ho, Wo)

    K = Cin * KH * KW
    M = N * Ho * Wo
    A = cols.reshape(K, M).astype(cdt)              # contraction index = cin*KH*KW+kh*KW+kw
    W2 = weight_oihw.reshape(Cout, K).astype(cdt)   # OIHW flatten matches A's ordering
    b2 = bias.reshape(Cout, 1).astype(jnp.float32)

    # Pad contraction dim to a sublane multiple and M to a lane-dense tile multiple.
    Kp = pl.cdiv(K, 8) * 8
    tM = min(pl.cdiv(M, 128) * 128, block_m)
    Mp = pl.cdiv(M, tM) * tM
    A = jnp.pad(A, ((0, Kp - K), (0, Mp - M)))
    W2 = jnp.pad(W2, ((0, 0), (0, Kp - K)))

    out = pl.pallas_call(
        _conv_mm_kernel,
        out_shape=jax.ShapeDtypeStruct((Cout, Mp), x_nchw.dtype),
        grid_spec=pltpu.PrefetchScalarGridSpec(
            num_scalar_prefetch=0,
            grid=(Mp // tM,),
            in_specs=[
                pl.BlockSpec((Kp, tM), lambda m: (0, m)),      # im2col tile
                pl.BlockSpec((Cout, Kp), lambda m: (0, 0)),    # weights, resident
                pl.BlockSpec((Cout, 1), lambda m: (0, 0)),     # bias, resident
            ],
            out_specs=pl.BlockSpec((Cout, tM), lambda m: (0, m)),
        ),
        compiler_params=pltpu.CompilerParams(
            dimension_semantics=("parallel",),
        ),
    )(A, W2, b2)

    # ---- glue: back to NCHW ----
    out = out[:, :M].reshape(Cout, N, Ho, Wo)
    return jnp.transpose(out, (1, 0, 2, 3))


def _reference(x, weight, bias, kernel_size, stride):
    Cout = weight.shape[0]
    p = kernel_size // 2
    x_pad = jnp.pad(x, ((0, 0), (0, 0), (p, p), (p, p)), mode="reflect")
    return lax.conv_general_dilated(
        x_pad, weight, window_strides=(stride, stride), padding="VALID",
        dimension_numbers=("NCHW", "OIHW", "NCHW"),
    ) + bias.reshape(1, Cout, 1, 1)


if __name__ == "__main__":
    # Small shapes consistent with the module: batch=2, Cin=4, Cout=8, 16x16, k=3.
    batch, in_channels, out_channels = 2, 4, 8
    H = W = 16
    kernel_size = 3

    key = jax.random.PRNGKey(0)
    kx, kw, kb = jax.random.split(key, 3)
    x = jax.random.normal(kx, (batch, in_channels, H, W), dtype=jnp.float32)
    weight = 0.1 * jax.random.normal(
        kw, (out_channels, in_channels, kernel_size, kernel_size), dtype=jnp.float32)
    bias = 0.1 * jax.random.normal(kb, (out_channels,), dtype=jnp.float32)

    # f32 path (module semantics), stride 1 and 2 (striding handled inside gather).
    for stride in (1, 2):
        out = jax.block_until_ready(
            conv_layer_forward(x, weight, bias, kernel_size, stride))
        ref = _reference(x, weight, bias, kernel_size, stride)
        assert out.shape == ref.shape, (out.shape, ref.shape)
        np.testing.assert_allclose(np.asarray(out), np.asarray(ref),
                                   atol=1e-4, rtol=1e-4)

    # Optional bf16 compute path (perf mode: halves DMA bytes, f32 accumulation).
    out_bf16 = jax.block_until_ready(
        conv_layer_forward(x, weight, bias, kernel_size, 1,
                           compute_dtype=jnp.bfloat16))
    ref = _reference(x, weight, bias, kernel_size, 1)
    np.testing.assert_allclose(np.asarray(out_bf16), np.asarray(ref),
                               atol=5e-2, rtol=5e-2)

    print("KERNEL_OK")
</pallas_src>

<mosaic_0001>
module attributes {stable_mosaic.version = 11 : i64} {
  func.func @_conv_mm_kernel(%arg0: i32, %arg1: memref<40x512xf32, #tpu.memory_space<vmem>>, %arg2: memref<8x40xf32, #tpu.memory_space<vmem>>, %arg3: memref<8x1xf32, #tpu.memory_space<vmem>>, %arg4: memref<8x512xf32, #tpu.memory_space<vmem>>) attributes {dimension_semantics = [#tpu.dimension_semantics<parallel>], iteration_bounds = array<i64: 1>, scalar_prefetch = 0 : i64, scratch_operands = 0 : i64, tpu.core_type = #tpu.core_type<tc>, window_params = [{transform_indices = @transform_0, window_bounds = array<i64: 40, 512>}, {pipeline_mode = #tpu.pipeline_mode<synchronous>, transform_indices = @transform_1, window_bounds = array<i64: 8, 40>}, {pipeline_mode = #tpu.pipeline_mode<synchronous>, transform_indices = @transform_2, window_bounds = array<i64: 8, 1>}, {transform_indices = @transform_3, window_bounds = array<i64: 8, 512>}]} {
    %c0 = arith.constant 0 : index
    %c0_0 = arith.constant 0 : index
    %0 = vector.load %arg2[%c0, %c0_0] : memref<8x40xf32, #tpu.memory_space<vmem>>, vector<8x40xf32>
    %c0_1 = arith.constant 0 : index
    %c0_2 = arith.constant 0 : index
    %1 = vector.load %arg1[%c0_1, %c0_2] : memref<40x512xf32, #tpu.memory_space<vmem>>, vector<40x512xf32>
    %cst = arith.constant dense<0.000000e+00> : vector<8x512xf32>
    %2 = tpu.matmul %0, %1, %cst {dimension_numbers = #tpu.dot_dimension_numbers<[1], [0], [0], [1], [0, 0, 1, 1], [], []>} : vector<8x40xf32>, vector<40x512xf32>, vector<8x512xf32> -> vector<8x512xf32>
    %c0_3 = arith.constant 0 : index
    %c0_4 = arith.constant 0 : index
    %3 = vector.load %arg3[%c0_3, %c0_4] : memref<8x1xf32, #tpu.memory_space<vmem>>, vector<8x1xf32>
    %4 = vector.broadcast %3 : vector<8x1xf32> to vector<8x512xf32>
    %5 = arith.addf %2, %4 : vector<8x512xf32>
    %c0_5 = arith.constant 0 : index
    %c0_6 = arith.constant 0 : index
    %6 = vector.load %arg4[%c0_5, %c0_6] : memref<8x512xf32, #tpu.memory_space<vmem>>, vector<8x512xf32>
    tpu.vector_store %arg4[%c0_5, %c0_6], %5 {strides = array<i32>} : memref<8x512xf32, #tpu.memory_space<vmem>>, vector<8x512xf32>,
    return
  }
  func.func @transform_0(%arg0: i32) -> (i32, i32) {
    %c0_i32 = arith.constant 0 : i32
    %c0_i32_0 = arith.constant 0 : i32
    return %c0_i32, %arg0 : i32, i32
  }
  func.func @transform_1(%arg0: i32) -> (i32, i32) {
    %c0_i32 = arith.constant 0 : i32
    %c0_i32_0 = arith.constant 0 : i32
    %c0_i32_1 = arith.constant 0 : i32
    return %c0_i32, %c0_i32_0 : i32, i32
  }
  func.func @transform_2(%arg0: i32) -> (i32, i32) {
    %c0_i32 = arith.constant 0 : i32
    %c0_i32_0 = arith.constant 0 : i32
    %c0_i32_1 = arith.constant 0 : i32
    return %c0_i32, %c0_i32_0 : i32, i32
  }
  func.func @transform_3(%arg0: i32) -> (i32, i32) {
    %c0_i32 = arith.constant 0 : i32
    %c0_i32_0 = arith.constant 0 : i32
    return %c0_i32, %arg0 : i32, i32
  }
}

</mosaic_0001>

<bundles_post_ra>
// kernel: tpu_custom_call.1
= control target key start
LH: loop header
LB: loop body
LE: loop exit
PB: predicated region body
PF: predicated region fallthrough
CT: control target
= control target key end

     0   :  { %8 = vsyncpa [#allocation3], 0  ;;  %s350_s0 = inlined_call_operand.hbm [shape: f32[40,512], index: 0, kind: input, shape index: {}]   ;;  %s351_s1 = inlined_call_operand.vmem [shape: f32[8,40], index: 1, kind: input, shape index: {}]   ;;  %s352_s2 = inlined_call_operand.vmem [shape: f32[8,1], index: 2, kind: input, shape index: {}]   ;;  %s353_s3 = inlined_call_operand.hbm [shape: f32[8,512], index: 3, kind: output, shape index: {}]  }
   0x1   :  { %9 = vsyncpa [#allocation4], 0  ;;  %s294_s12 = smov [#allocation2]   ;;  %s246_s16 = scalar_lea.hbm %s350_s0, 2560 }
   0x2   :  { %s15_s13 = sshll.u32 %s294_s12, 4  ;;  %p247_p0 = scmp.ne.s32.totalorder %s350_s0, %s246_s16  ;;  %s16_s13 = int_to_ptr.vmem [resolvable:$true] %s15_s13 }
   0x3   :  { %p250_p1 = scmp.lt.u32.totalorder %s246_s16, %s350_s0 }
   0x5   :  { %p252_p2 = pnand %p250_p1, %p247_p0 }
   0x7   :  { %255 = shalt.err (!%p252_p2)
}
   0x8   :  { %s256_s21 = scalar_lea.vmem %s16_s13, 2560  ;;  %p261_p4 = scmp.lt.s32.totalorder %s16_s13, %s16_s13 }
   0x9   :  { %p257_p3 = scmp.ne.s32.totalorder %s16_s13, %s256_s21  ;;  %p262_p5 = scmp.lt.s32.totalorder %s256_s21, %s256_s21 }
   0xb   :  { %p263_p6 = por %p262_p5, %p261_p4 }
   0xd   :  { %p264_p7 = pnand %p263_p6, %p257_p3 }
   0xf   :  { %267 = shalt.err (!%p264_p7)
}
  0x10   :  { %s295_s22 = smov 512   ;;  %s296_s23 = smov 32  }
  0x11   :  { %21 = dma.hbm_to_vmem [thread:$0]  %s350_s0, 2560, %s16_s13, [#allocation3], %s295_s22, %s295_s22, %s296_s23  }
  0x12   :  { %290 = dma.done.wait [#allocation3], 2560  }
  0x13   :  { %291 = vsyncadd [#allocation3], 4294964736  ;;  %v297_v0 = vmov 0.0   ;;  %v298_v1 = vmov 0   ;;  %v31_v2 = vld [vmem:[#allocation2 + $0x8] sm:$0xff]  ;;  %v33_v4 = vld [vmem:[#allocation2 + $0x18] sm:$0xff] }
  0x14   :  { %124 = vmatprep.mubr.f32.mxu0 %v297_v0  ;;  %195 = vmatprep.mubr.f32.mxu1 %v297_v0  ;;  %v35_v3 = vld [vmem:[#allocation2 + $0x28] sm:$0xff]  ;;  %v37_v6 = vld [vmem:[#allocation2 + $0x38] sm:$0xff]  ;;  %v30_v7 = vld [vmem:[#allocation2] sm:$0xff]  ;;  %vm56_vm0 = vcmask 326656   ;;  %s299_s29 = smov [#allocation5]  }
  0x15   :  { %245 = vset.pattern.permute.xlu0 %v298_v1  ;;  %v223_v5 = vpack.c.bf16 %v35_v3, %v31_v2  ;;  %v34_v8 = vld [vmem:[#allocation2 + $0x20] sm:$0xff]  ;;  %v231_v9 = vpack.c.bf16 %v37_v6, %v33_v4  ;;  %v32_v11 = vld [vmem:[#allocation2 + $0x10] sm:$0xff]  ;;  %v39_v13 = vld [vmem:[#allocation2 + $0x48] sm:$0xff] }
  0x16   :  { %v225_v10 = vpack.c.bf16 %v34_v8, %v30_v7  ;;  %v36_v12 = vld [vmem:[#allocation2 + $0x30] sm:$0xff]  ;;  %v43_v15 = vld [vmem:[#allocation2 + $0x68] sm:$0xff]  ;;  %v41_v16 = vld [vmem:[#allocation2 + $0x58] sm:$0xff] }
  0x17   :  { %224 = vmatprep.subr.bf16.mxu0 %v223_v5  ;;  %v233_v14 = vpack.c.bf16 %v36_v12, %v32_v11  ;;  %v45_v17 = vld [vmem:[#allocation2 + $0x78] sm:$0xff]  ;;  %232 = vmatprep.subr.bf16.mxu1 %v231_v9  ;;  %v227_v18 = vpack.c.bf16 %v43_v15, %v39_v13  ;;  %v38_v20 = vld [vmem:[#allocation2 + $0x40] sm:$0xff]  ;;  %v40_v22 = vld [vmem:[#allocation2 + $0x50] sm:$0xff] }
  0x18   :  { %226 = vmatpush1.bf16.msra.mxu0 %v225_v10  ;;  %v235_v19 = vpack.c.bf16 %v45_v17, %v41_v16  ;;  %v42_v21 = vld [vmem:[#allocation2 + $0x60] sm:$0xff]  ;;  %v44_v24 = vld [vmem:[#allocation2 + $0x70] sm:$0xff]  ;;  %v47_v26 = vld [vmem:[#allocation2 + $0x88] sm:$0xff] }
  0x19   :  { %234 = vmatpush1.bf16.msra.mxu1 %v233_v14  ;;  %v229_v23 = vpack.c.bf16 %v42_v21, %v38_v20  ;;  %228 = vmatprep.subr.bf16.mxu0 %v227_v18  ;;  %v237_v25 = vpack.c.bf16 %v44_v24, %v40_v22  ;;  %v49_v27 = vld [vmem:[#allocation2 + $0x98] sm:$0xff]  ;;  %v50_v28 = vld [vmem:[%s352_s2] sm:$0xff]  ;;  %v48_v30 = vld [vmem:[#allocation2 + $0x90] sm:$0xff]  ;;  %s212_s2 = sshll.u32 %s299_s29, 4  ;;  %s213_s2 = int_to_ptr.vmem [resolvable:$true] %s212_s2 }
  0x1a   :  { %236 = vmatprep.subr.bf16.mxu1 %v235_v19  ;;  %53 = vperm.xlu0 %245, %v50_v28   ;;  %v46_v29 = vld [vmem:[#allocation2 + $0x80] sm:$0xff]  ;;  %p273_p9 = scmp.lt.s32.totalorder %s213_s2, %s213_s2 }
  0x1b   :  { %v29_v31 = vld [vmem:[%s351_s1] sm:$0xff]  ;;  %s268_s1 = scalar_lea.vmem %s213_s2, 512 }
  0x1c   :  { %230 = vmatpush1.bf16.msra.mxu0 %v229_v23  ;;  %p269_p8 = scmp.ne.s32.totalorder %s213_s2, %s268_s1  ;;  %p274_p10 = scmp.lt.s32.totalorder %s268_s1, %s268_s1 }
  0x1d   :  { %238 = vmatpush1.bf16.msra.mxu1 %v237_v25  ;;  %68 = vmatprep.subr.mxu0 %v47_v26 }
  0x1e   :  { %139 = vmatprep.subr.mxu1 %v49_v27  ;;  %p275_p11 = por %p274_p10, %p273_p9 }
  0x20   :  { %69 = vmatpush1.msra.mxu0 %v46_v29  ;;  %p276_p12 = pnand %p275_p11, %p269_p8 }
  0x21   :  { %140 = vmatpush1.msra.mxu1 %v48_v30  ;;  %221 = vmatmul.mubr.msk.f32.vlgmr.msra.gmra.mrb[0].mxu0 %vm56_vm0, %v29_v31 }
  0x22   :  { %222 = vmatmul.mubr.msk.f32.vlgmr.msra.gmra.mrb[0].mxu1 %vm56_vm0, %v29_v31 }
  0x99   :  { %v54_v32 = vpop.permute.xlu0 %53 }
  0xf4   :  { %v126_v33 = vpop.f32.mrb[0].mxu0 }
  0xf5   :  { %v127_v34 = vadd.f32 %v126_v33, %v54_v32  ;;  %v197_v35 = vpop.f32.mrb[0].mxu1  ;;  %v128_v36 = vpop.f32.mrb[1].mxu0 }
  0xf6   :  { %v198_v37 = vadd.f32 %v197_v35, %v54_v32  ;;  %v129_v38 = vadd.f32 %v128_v36, %v54_v32  ;;  %v199_v39 = vpop.f32.mrb[1].mxu1 }
  0xf7   :  { %202 = vst [vmem:[#allocation5] sm:$0xff] %v127_v34  ;;  %v200_v40 = vadd.f32 %v199_v39, %v54_v32 }
  0xf8   :  { %204 = vst [vmem:[#allocation5 + $0x10] sm:$0xff] %v198_v37  ;;  %203 = vst [vmem:[#allocation5 + $0x8] sm:$0xff] %v129_v38 }
  0xf9   :  { %205 = vst [vmem:[#allocation5 + $0x18] sm:$0xff] %v200_v40 }
  0xfa   :  { %279 = shalt.err (!%p276_p12)
}
  0xfb   :  { %s280_s5 = scalar_lea.hbm %s353_s3, 512 }
  0xfc   :  { %p281_p13 = scmp.ne.s32.totalorder %s353_s3, %s280_s5  ;;  %p284_p0 = scmp.lt.u32.totalorder %s280_s5, %s353_s3 }
  0xfe   :  { %p286_p1 = pnand %p284_p0, %p281_p13 }
 0x100   :  { %289 = shalt.err (!%p286_p1)
}
 0x101   :  { %215 = dma.vmem_to_hbm [thread:$0]  %s213_s2, 512, %s353_s3, [#allocation4]  }
 0x102   :  { %292 = dma.done.wait [#allocation4], 512  }
 0x103   :  { %293 = vsyncadd [#allocation4], 4294966784 }
 0x104   :  { %219 = vsyncpa [#allocation3], 1 }
 0x105   :  { %220 = vsyncpa [#allocation4], 1 }

</bundles_post_ra>
